<compile_context>
chip_gen: v7x
topology: tpu7x:2x2x1
jax: 0.10.0
libtpu: 0.0.40
codegen_flags: <defaults>
</compile_context>

<pallas_src>
import numpy as np
import jax
import jax.numpy as jnp
from jax.experimental import pallas as pl
from jax.experimental.pallas import tpu as pltpu

_LANES = 128
_SUBLANES = 8


def _cdiv(a, b):
    return -(-a // b)


def _round_up(a, b):
    return _cdiv(a, b) * b


def _psnr_sse_kernel(pred_ref, target_ref, out_ref):
    """Accumulate per-sample SSE of the raw (untransformed) diff.

    pred_ref/target_ref: (B, tile_r, 128) blocks (native dtype, upcast here).
    out_ref:             (1, B, 128) partial-SSE block, resident across the
                         arbitrary (reduction) grid axis for this partition.
    """
    k = pl.program_id(1)

    @pl.when(k == 0)
    def _():
        out_ref[...] = jnp.zeros_like(out_ref)

    # Affine transform folded out:
    #   ((x*0.5+0.5)*255) - ((y*0.5+0.5)*255) = 127.5 * (x - y)
    # so SSE(transformed) = 127.5^2 * SSE(raw diff); constant applied in wrapper.
    d = pred_ref[...].astype(jnp.float32) - target_ref[...].astype(jnp.float32)
    out_ref[...] += jnp.sum(d * d, axis=1)[None]  # (1, B, 128)


def psnr_loss(pred, target, loss_weight=1.0, toY=False, *,
              num_partitions=2, block_byte_budget=6 * 1024 * 1024):
    if toY:
        # TODO(synk): toY=True luma path not implemented in-kernel.
        raise NotImplementedError("PSNRLoss Pallas kernel only supports toY=False")
    assert pred.ndim == 4 and target.ndim == 4, "inputs must be NCHW"
    assert pred.shape == target.shape

    B, C, H, W = pred.shape
    M = C * H * W
    itemsize = pred.dtype.itemsize  # keep native dtype (bf16 stays bf16 in HBM)

    pred_f = pred.reshape(B, M)
    target_f = target.reshape(B, M)

    # Lane-dense layout: (B, R, 128) rows of 128 lanes.
    R = _cdiv(M, _LANES)

    # Rows per block from a VMEM byte budget; multiple of 8 sublanes.
    rows_budget = max(_SUBLANES,
                      (block_byte_budget // (B * _LANES * itemsize))
                      // _SUBLANES * _SUBLANES)
    rows_per_part = _round_up(_cdiv(R, num_partitions), _SUBLANES)
    tile_r = max(_SUBLANES, min(rows_budget, rows_per_part))

    P = num_partitions
    K = _cdiv(R, P * tile_r)              # blocks per partition (arbitrary axis)
    R_pad = P * K * tile_r
    M_pad = R_pad * _LANES

    if M_pad != M:
        pad = M_pad - M
        pred_f = jnp.pad(pred_f, ((0, 0), (0, pad)))
        target_f = jnp.pad(target_f, ((0, 0), (0, pad)))
    pred3 = pred_f.reshape(B, R_pad, _LANES)
    target3 = target_f.reshape(B, R_pad, _LANES)

    def in_map(p, k):
        return (0, p * K + k, 0)

    block_bytes = B * tile_r * _LANES * itemsize
    # 2 inputs x 2 pipeline buffers + slack; stay well under v7x's 64 MiB VMEM.
    vmem_limit = int(min(56 * 1024 * 1024,
                         max(32 * 1024 * 1024, 4 * block_bytes + 4 * 1024 * 1024)))

    cost = pl.CostEstimate(
        flops=3 * B * M_pad,
        transcendentals=0,
        bytes_accessed=2 * B * M_pad * itemsize + P * B * _LANES * 4,
    )

    partial = pl.pallas_call(
        _psnr_sse_kernel,
        out_shape=jax.ShapeDtypeStruct((P, B, _LANES), jnp.float32),
        grid_spec=pltpu.PrefetchScalarGridSpec(
            num_scalar_prefetch=0,
            grid=(P, K),
            in_specs=[pl.BlockSpec((B, tile_r, _LANES), in_map),
                      pl.BlockSpec((B, tile_r, _LANES), in_map)],
            out_specs=pl.BlockSpec((1, B, _LANES), lambda p, k: (p, 0, 0)),
        ),
        compiler_params=pltpu.CompilerParams(
            dimension_semantics=("parallel", "arbitrary"),
            vmem_limit_bytes=vmem_limit),
        cost_estimate=cost,
    )(pred3, target3)

    # Epilogue in plain JAX: combine partitions + lanes, apply folded constants.
    sse = jnp.sum(partial, axis=(0, 2))                   # (B,) raw-diff SSE
    mse = sse * (127.5 * 127.5 / M) + 1e-8                # (B,)
    scale = 10.0 / np.log(10.0)
    return loss_weight * scale * jnp.mean(jnp.log(mse))


def psnr_loss_ref(pred, target, loss_weight=1.0):
    """Pure-JAX reference mirroring the PyTorch forward (toY=False)."""
    scale = 10.0 / np.log(10.0)
    p = (pred.astype(jnp.float32) * 0.5 + 0.5) * 255.0
    t = (target.astype(jnp.float32) * 0.5 + 0.5) * 255.0
    mse = jnp.mean((p - t) ** 2, axis=(1, 2, 3)) + 1e-8
    return loss_weight * scale * jnp.mean(jnp.log(mse))


if __name__ == "__main__":
    key = jax.random.PRNGKey(0)
    k1, k2 = jax.random.split(key)
    B, C, H, W = 2, 4, 16, 16
    pred = jax.random.uniform(k1, (B, C, H, W), jnp.float32, -1.0, 1.0)
    target = jax.random.uniform(k2, (B, C, H, W), jnp.float32, -1.0, 1.0)

    loss = jax.block_until_ready(psnr_loss(pred, target, loss_weight=1.0))
    ref = jax.block_until_ready(psnr_loss_ref(pred, target, loss_weight=1.0))

    np.testing.assert_allclose(np.asarray(loss), np.asarray(ref), rtol=1e-5, atol=1e-5)
    print("KERNEL_OK")
</pallas_src>

<mosaic_0001>
module attributes {stable_mosaic.version = 11 : i64} {
  func.func @_psnr_sse_kernel(%arg0: i32, %arg1: i32, %arg2: memref<2x8x128xf32, #tpu.memory_space<vmem>>, %arg3: memref<2x8x128xf32, #tpu.memory_space<vmem>>, %arg4: memref<1x2x128xf32, #tpu.memory_space<vmem>>) attributes {dimension_semantics = [#tpu.dimension_semantics<parallel>, #tpu.dimension_semantics<arbitrary>], iteration_bounds = array<i64: 2, 1>, scalar_prefetch = 0 : i64, scratch_operands = 0 : i64, tpu.core_type = #tpu.core_type<tc>, window_params = [{transform_indices = @transform_0, window_bounds = array<i64: 2, 8, 128>}, {transform_indices = @transform_1, window_bounds = array<i64: 2, 8, 128>}, {transform_indices = @transform_2, window_bounds = array<i64: 1, 2, 128>}]} {
    %c0_i32 = arith.constant 0 : i32
    %0 = arith.cmpi eq, %arg1, %c0_i32 : i32
    %1 = arith.extui %0 : i1 to i32
    %c0_i32_0 = arith.constant 0 : i32
    %2 = arith.cmpi ne, %1, %c0_i32_0 : i32
    scf.if %2 {
      %cst_12 = arith.constant 0.000000e+00 : f32
      %12 = vector.broadcast %cst_12 : f32 to vector<1x2x128xf32>
      %c0_13 = arith.constant 0 : index
      %c0_14 = arith.constant 0 : index
      %c0_15 = arith.constant 0 : index
      %13 = vector.load %arg4[%c0_13, %c0_14, %c0_15] : memref<1x2x128xf32, #tpu.memory_space<vmem>>, vector<1x2x128xf32>
      tpu.vector_store %arg4[%c0_13, %c0_14, %c0_15], %12 {strides = array<i32>} : memref<1x2x128xf32, #tpu.memory_space<vmem>>, vector<1x2x128xf32>,
    } else {
    }
    %c0 = arith.constant 0 : index
    %c0_1 = arith.constant 0 : index
    %c0_2 = arith.constant 0 : index
    %3 = vector.load %arg2[%c0, %c0_1, %c0_2] : memref<2x8x128xf32, #tpu.memory_space<vmem>>, vector<2x8x128xf32>
    %c0_3 = arith.constant 0 : index
    %c0_4 = arith.constant 0 : index
    %c0_5 = arith.constant 0 : index
    %4 = vector.load %arg3[%c0_3, %c0_4, %c0_5] : memref<2x8x128xf32, #tpu.memory_space<vmem>>, vector<2x8x128xf32>
    %5 = arith.subf %3, %4 : vector<2x8x128xf32>
    %c0_6 = arith.constant 0 : index
    %c0_7 = arith.constant 0 : index
    %c0_8 = arith.constant 0 : index
    %6 = vector.load %arg4[%c0_6, %c0_7, %c0_8] : memref<1x2x128xf32, #tpu.memory_space<vmem>>, vector<1x2x128xf32>
    %7 = arith.mulf %5, %5 : vector<2x8x128xf32>
    %cst = arith.constant dense<0.000000e+00> : vector<2x128xf32>
    %8 = vector.multi_reduction <add>, %7, %cst [1] : vector<2x8x128xf32> to vector<2x128xf32>
    %9 = vector.shape_cast %8 : vector<2x128xf32> to vector<1x2x128xf32>
    %10 = arith.addf %6, %9 : vector<1x2x128xf32>
    %c0_9 = arith.constant 0 : index
    %c0_10 = arith.constant 0 : index
    %c0_11 = arith.constant 0 : index
    %11 = vector.load %arg4[%c0_9, %c0_10, %c0_11] : memref<1x2x128xf32, #tpu.memory_space<vmem>>, vector<1x2x128xf32>
    tpu.vector_store %arg4[%c0_9, %c0_10, %c0_11], %10 {strides = array<i32>} : memref<1x2x128xf32, #tpu.memory_space<vmem>>, vector<1x2x128xf32>,
    return
  }
  func.func @transform_0(%arg0: i32, %arg1: i32) -> (i32, i32, i32) {
    %c1_i32 = arith.constant 1 : i32
    %0 = arith.muli %arg0, %c1_i32 : i32
    %1 = arith.addi %0, %arg1 : i32
    %c0_i32 = arith.constant 0 : i32
    %c0_i32_0 = arith.constant 0 : i32
    %c0_i32_1 = arith.constant 0 : i32
    return %c0_i32, %1, %c0_i32_0 : i32, i32, i32
  }
  func.func @transform_1(%arg0: i32, %arg1: i32) -> (i32, i32, i32) {
    %c1_i32 = arith.constant 1 : i32
    %0 = arith.muli %arg0, %c1_i32 : i32
    %1 = arith.addi %0, %arg1 : i32
    %c0_i32 = arith.constant 0 : i32
    %c0_i32_0 = arith.constant 0 : i32
    %c0_i32_1 = arith.constant 0 : i32
    return %c0_i32, %1, %c0_i32_0 : i32, i32, i32
  }
  func.func @transform_2(%arg0: i32, %arg1: i32) -> (i32, i32, i32) {
    %c0_i32 = arith.constant 0 : i32
    %c0_i32_0 = arith.constant 0 : i32
    %c0_i32_1 = arith.constant 0 : i32
    return %arg0, %c0_i32, %c0_i32_0 : i32, i32, i32
  }
}

</mosaic_0001>

<bundles_post_ra>
// kernel: tpu_custom_call.1
= control target key start
LH: loop header
LB: loop body
LE: loop exit
PB: predicated region body
PF: predicated region fallthrough
CT: control target
= control target key end

     0   :  { %7 = vsyncpa [#allocation3], 0  ;;  %s866_s0 = inlined_call_operand.hbm [shape: f32[2,16,128], index: 0, kind: input, shape index: {}]   ;;  %s867_s1 = inlined_call_operand.hbm [shape: f32[2,16,128], index: 1, kind: input, shape index: {}]   ;;  %s868_s2 = inlined_call_operand.hbm [shape: f32[2,2,128], index: 2, kind: output, shape index: {}]  }
   0x1   :  { %9 = vsyncpa [#allocation3 + $0x1], 0 }
   0x2   :  { %10 = vsyncpa [#allocation6], 0 }
   0x3   :  { %12 = vsyncpa [#allocation6 + $0x1], 0 }
   0x4   :  { %13 = vsyncpa [#allocation4], 0 }
   0x5   :  { %15 = vsyncpa [#allocation4 + $0x1], 0  ;;  %s627_s9 = smov 0   ;;  %s629_s10 = smov 0  }
   0x6   :  { %s631_s11 = smov 0   ;;  %s633_s12 = smov 0  }
   0x7   :  { %s635_s13 = smov 0   ;;  %s637_s14 = smov 0  }
   0x8 LB: > { %s370_s15 = sadd.s32 4294967295, %s603_s14   ;;  %s371_s16 = sadd.s32 4294967294, %s603_s14   ;;  %s603_s14 = sphi %s637_s14, %s21_s14   ;;  %s599_s13 = sphi %s635_s13, %s885_s13   ;;  %s595_s12 = sphi %s633_s12, %s884_s12   ;;  %s591_s11 = sphi %s631_s11, %s883_s11   ;;  %s587_s10 = sphi %s629_s10, %s882_s10   ;;  %s583_s9 = sphi %s627_s9, %s881_s9  }
   0x9   : > { %s33_s17 = sadd.s32 1, %s599_s13  ;;  %s42_s18 = sadd.s32 1, %s591_s11 }
   0xa   : > { %p35_p0 = scmp.ge.s32.totalorder %s33_s17, 2  ;;  %p49_p1 = scmp.ne.s32.totalorder %s591_s11, %s587_s10 }
   0xb   : > { %p50_p2 = scmp.eq.s32.totalorder %s603_s14, 0  ;;  %p55_p3 = scmp.ne.s32.totalorder %s587_s10, %s583_s9 }
   0xc   : > { %s887_s17 = smov (%p35_p0, %s33_s17), 0  ;;  %p56_p5 = scmp.eq.s32.totalorder %s370_s15, 0 }
   0xd   : > { %p668_p4 = por %p50_p2, %p49_p1  ;;  %s39_s20 = ssub.s32 %s599_s13, %s887_s17 }
   0xe   : > { %p107_p6 = scmp.eq.s32.totalorder %s370_s15, 1  ;;  %p40_p7 = scmp.eq.s32.totalorder %s39_s20, 0 }
   0xf   : > { %p674_p8 = por %p56_p5, %p55_p3  ;;  %p113_p10 = scmp.eq.s32.totalorder %s371_s16, 1 }
  0x10   : > { %p678_p9 = por %p107_p6, %p49_p1  ;;  %p403_p13 = scmp.lt.s32.totalorder %s603_s14, 2 }
  0x11   : > { %s872_s21 = scalar_select %p674_p8, 1, 0 }
  0x12   : > { %s873_s22 = scalar_select %p678_p9, 1, 0 }
  0x13   : > { %s683_s23 = scalar_select %p40_p7, %s591_s11, %s42_s18  }
  0x14   : > { %p685_p11 = por %p113_p10, %p55_p3  ;;  %s692_s25 = sand.u32 1, %s591_s11  }
  0x15   : > { %s374_s26 = sshll.u32 %s692_s25, 4  ;;  %s375_s27 = sshll.u32 %s599_s13, 7 }
  0x16   : > { %s874_s24 = scalar_select %p685_p11, 1, 0 }
  0x17   : > { %s701_s30 = scalar_lea.hbm %s866_s0, %s375_s27  ;;  %s137_s3 = scalar_lea.vmem [#allocation2], %s374_s26 }
  0x18   : > { %s144_s4 = sshll.u32 %s137_s3, 4  ;;  %p709_p0 = pnand %p403_p13, %p668_p4  ;;  %s705_s4 = int_to_ptr.vmem [resolvable:$true] %s144_s4 }
  0x19   : > { %s134_s6 = scalar_lea.sflag [#allocation3], %s692_s25  ;;  %s457_s7 = scalar_lea.hbm %s701_s30, 256 }
  0x1a   : > { %p458_p1 = scmp.ne.s32.totalorder %s701_s30, %s457_s7  ;;  %p459_p2 = pneg %p709_p0 }
  0x1b   : > { %s462_s16 = scalar_lea.hbm %s866_s0, 512  ;;  %p463_p4 = scmp.lt.u32.totalorder %s701_s30, %s866_s0 }
  0x1c   : > { %p460_p3 = pnand %p459_p2, %p458_p1  ;;  %p464_p6 = scmp.lt.u32.totalorder %s462_s16, %s457_s7 }
  0x1d   : > { %p466_p10 = scmp.lt.u32.totalorder %s457_s7, %s701_s30 }
  0x1e   : > { %p461_p5 = pneg %p460_p3  ;;  %p465_p7 = por %p464_p6, %p463_p4 }
  0x20   : > { %p467_p13 = por %p466_p10, %p465_p7 }
  0x22   : > { %p468_p12 = pnand %p467_p13, %p461_p5 }
  0x24   : > { %471 = shalt.err (!%p468_p12)
}
  0x25   : > { %s472_s20 = scalar_lea.vmem %s705_s4, 256  ;;  %s605_s28 = smov [#allocation2]  }
  0x26   : > { %p473_p1 = scmp.ne.s32.totalorder %s705_s4, %s472_s20  ;;  %s477_s29 = sshll.u32 %s605_s28, 4  ;;  %s478_s29 = int_to_ptr.vmem [resolvable:$false] %s477_s29 }
  0x27   : > { %s479_s3 = scalar_lea.vmem %s478_s29, 512  ;;  %p480_p9 = scmp.lt.s32.totalorder %s705_s4, %s478_s29 }
  0x28   : > { %p475_p3 = pnand %p473_p1, %p459_p2  ;;  %p481_p4 = scmp.lt.s32.totalorder %s479_s3, %s472_s20 }
  0x2a   : > { %p476_p11 = pneg %p475_p3  ;;  %p482_p6 = por %p481_p4, %p480_p9 }
  0x2c   : > { %p483_p7 = pnand %p482_p6, %p476_p11 }
  0x2e   : > { %486 = shalt.err (!%p483_p7)
}
  0x2f   : > { %s606_s7 = smov 256   ;;  %s607_s8 = smov 128  }
  0x30   : > { %s608_s15 = smov 8   ;;  %p378_p9 = scmp.ge.s32.totalorder %s603_s14, 1 }
  0x31   : > { %395 = dma.hbm_to_vmem [thread:$0]  (!%p709_p0), %s701_s30, 256, %s705_s4, %s134_s6, %s606_s7, %s607_s8, %s608_s15  }
  0x32   : > { %p173_p11 = scmp.lt.s32.totalorder %s603_s14, 3  ;;  %s755_s20 = scalar_lea.hbm %s867_s1, %s375_s27 }
  0x33   : > { %s158_s28 = scalar_lea.vmem [#allocation5], %s374_s26  ;;  %s155_s30 = scalar_lea.sflag [#allocation6], %s692_s25 }
  0x34   : > { %p746_p12 = pnand %p378_p9, %p173_p11  ;;  %s165_s29 = sshll.u32 %s158_s28, 4  ;;  %s759_s29 = int_to_ptr.vmem [resolvable:$true] %s165_s29 }
  0x35   : > { %s487_s4 = scalar_lea.hbm %s755_s20, 256  ;;  %s492_s27 = scalar_lea.hbm %s867_s1, 512 }
  0x36   : > { %p488_p5 = scmp.ne.s32.totalorder %s755_s20, %s487_s4  ;;  %p493_p1 = scmp.lt.u32.totalorder %s755_s20, %s867_s1 }
  0x37   : > { %p494_p3 = scmp.lt.u32.totalorder %s492_s27, %s487_s4  ;;  %p496_p6 = scmp.lt.u32.totalorder %s487_s4, %s755_s20 }
  0x38   : > { %p490_p10 = pnand %p488_p5, %p459_p2 }
  0x39   : > { %p495_p4 = por %p494_p3, %p493_p1 }
  0x3a   : > { %p491_p13 = pneg %p490_p10 }
  0x3b   : > { %p497_p7 = por %p496_p6, %p495_p4 }
  0x3d   : > { %p498_p9 = pnand %p497_p7, %p491_p13 }
  0x3f   : > { %501 = shalt.err (!%p498_p9)
}
  0x40   : > { %s502_s26 = scalar_lea.vmem %s759_s29, 256  ;;  %s609_s28 = smov [#allocation5]  }
  0x41   : > { %p503_p11 = scmp.ne.s32.totalorder %s759_s29, %s502_s26  ;;  %s507_s6 = sshll.u32 %s609_s28, 4  ;;  %s508_s6 = int_to_ptr.vmem [resolvable:$false] %s507_s6 }
  0x42   : > { %s509_s3 = scalar_lea.vmem %s508_s6, 512  ;;  %p510_p8 = scmp.lt.s32.totalorder %s759_s29, %s508_s6 }
  0x43   : > { %p505_p5 = pnand %p503_p11, %p459_p2  ;;  %p511_p1 = scmp.lt.s32.totalorder %s509_s3, %s502_s26 }
  0x45   : > { %p506_p10 = pneg %p505_p5  ;;  %p512_p3 = por %p511_p1, %p510_p8 }
  0x47   : > { %p513_p4 = pnand %p512_p3, %p506_p10 }
  0x49   : > { %516 = shalt.err (!%p513_p4)
}
  0x4a   : > { %398 = dma.hbm_to_vmem [thread:$0]  (!%p709_p0), %s755_s20, 256, %s759_s29, %s155_s30, %s606_s7, %s607_s8, %s608_s15  }
  0x4b   : > { %177 = sbr.rel (%p746_p12) target bundleno = 120 (0x78), region = 28  ;;  %s793_s4 = sand.u32 (!%p746_p12), 1, %s587_s10  }
  0x4c   : > { %s379_s27 = sshll.u32 (!%p746_p12), %s793_s4, 4  ;;  %s180_s18 = scalar_lea.sflag (!%p746_p12), [#allocation3], %s793_s4 }
  0x4d   : > { %s183_s5 = scalar_lea.vmem (!%p746_p12), [#allocation2], %s379_s27  ;;  %p877_p8 = scmp.ne.s32.totalorder (!%p746_p12), %s872_s21, 0 }
  0x52   : > { %570 = dma.done.wait (%p877_p8), %s180_s18, 256  }
  0x53   : > { %572 = vsyncadd (%p877_p8), %s180_s18, 4294967040  ;;  %s189_s25 = scalar_lea.sflag [#allocation6], %s793_s4  ;;  %s192_s7 = scalar_lea.vmem [#allocation5], %s379_s27 }
  0x54   : > { %574 = dma.done.wait (%p877_p8), %s189_s25, 256  }
  0x55   : > { %576 = vsyncadd (%p877_p8), %s189_s25, 4294967040  ;;  %s381_s8 = sshll.u32 %s793_s4, 1  ;;  %v610_v0 = vmov 0.0   ;;  %v225_v1 = vld [vmem:[%s183_s5] sm:$0xff]  ;;  %v226_v2 = vld [vmem:[%s183_s5 + $0x8] sm:$0xff]  ;;  %vm248_vm0 = vcmask 1041409  }
  0x56   : > { %s807_s15 = scalar_lea.vmem [#allocation7], %s381_s8  ;;  %v227_v3 = vld [vmem:[%s192_s7] sm:$0xff]  ;;  %v228_v4 = vld [vmem:[%s192_s7 + $0x8] sm:$0xff]  ;;  %s383_s21 = sshll.u32 %s595_s12, 5 }
  0x57   : > { %224 = vst [vmem:[%s807_s15] sm:$0x3] %v610_v0  ;;  %v229_v5 = vsub.f32 %v225_v1, %v227_v3  ;;  %v230_v6 = vsub.f32 %v226_v2, %v228_v4  ;;  %s267_s16 = sshll.u32 %s807_s15, 4  ;;  %s816_s30 = scalar_lea.hbm %s868_s2, %s383_s21  ;;  %s818_s16 = int_to_ptr.vmem [resolvable:$true] %s267_s16 }
  0x58   : > { %s254_s19 = scalar_lea.sflag [#allocation4], %s793_s4  ;;  %s517_s26 = scalar_lea.vmem %s818_s16, 32 }
  0x59   : > { %v232_v7 = vmul.f32 %v229_v5, %v229_v5  ;;  %v233_v8 = vmul.f32 %v230_v6, %v230_v6  ;;  %p518_p0 = scmp.ne.s32.totalorder %s818_s16, %s517_s26  ;;  %p878_p2 = scmp.ne.s32.totalorder %s873_s22, 0 }
  0x5a   : > { %s611_s12 = smov [#allocation7]  }
  0x5b   : > { %v234_v9 = vrot.slane %v232_v7, 4  ;;  %v240_v10 = vrot.slane %v233_v8, 4  ;;  %p519_p12 = pnand %p518_p0, %p878_p2  ;;  %s521_s28 = sshll.u32 %s611_s12, 4  ;;  %s522_s28 = int_to_ptr.vmem [resolvable:$false] %s521_s28 }
  0x5c   : > { %s523_s6 = scalar_lea.vmem %s522_s28, 64  ;;  %p524_p6 = scmp.lt.s32.totalorder %s818_s16, %s522_s28 }
  0x5d   : > { %v235_v11 = vadd.f32 %v234_v9, %v232_v7  ;;  %v241_v12 = vadd.f32 %v240_v10, %v233_v8  ;;  %p520_p13 = pneg %p519_p12  ;;  %p525_p7 = scmp.lt.s32.totalorder %s523_s6, %s517_s26 }
  0x5e   : > { %v231_v20 = vld [vmem:[%s807_s15] sm:$0x3] }
  0x5f   : > { %v236_v13 = vrot.slane %v235_v11, 2  ;;  %v242_v14 = vrot.slane %v241_v12, 2  ;;  %p526_p9 = por %p525_p7, %p524_p6 }
  0x61   : > { %v237_v15 = vadd.f32 %v236_v13, %v235_v11  ;;  %v243_v16 = vadd.f32 %v242_v14, %v241_v12  ;;  %p527_p11 = pnand %p526_p9, %p520_p13 }
  0x63   : > { %v238_v17 = vrot.slane %v237_v15, 1  ;;  %v244_v18 = vrot.slane %v243_v16, 1 }
  0x65   : > { %v239_v19 = vadd.f32 %v238_v17, %v237_v15  ;;  %v245_v21 = vadd.f32 %v244_v18, %v243_v16 }
  0x67   : > { %v249_v22 = vsel %vm248_vm0, %v245_v21, %v239_v19 }
  0x68   : > { %v251_v23 = vadd.f32 %v249_v22, %v231_v20 }
  0x6a   : > { %252 = vst [vmem:[%s807_s15] sm:$0x3] %v251_v23 }
  0x6b   : > { %530 = shalt.err (!%p527_p11)
}
  0x6c   : > { %s531_s3 = scalar_lea.hbm %s816_s30, 32  ;;  %s535_s18 = scalar_lea.hbm %s868_s2, 64 }
  0x6d   : > { %p532_p5 = scmp.ne.s32.totalorder %s816_s30, %s531_s3  ;;  %p536_p3 = scmp.lt.u32.totalorder %s816_s30, %s868_s2 }
  0x6e   : > { %p537_p4 = scmp.lt.u32.totalorder %s535_s18, %s531_s3  ;;  %p539_p0 = scmp.lt.u32.totalorder %s531_s3, %s816_s30 }
  0x6f   : > { %p533_p10 = pnand %p532_p5, %p878_p2 }
  0x70   : > { %p538_p8 = por %p537_p4, %p536_p3 }
  0x71   : > { %p534_p1 = pneg %p533_p10 }
  0x72   : > { %p540_p12 = por %p539_p0, %p538_p8 }
  0x74   : > { %p541_p13 = pnand %p540_p12, %p534_p1 }
  0x76   : > { %544 = shalt.err (!%p541_p13)
}
  0x77   : > { %390 = dma.vmem_to_hbm [thread:$0]  (%p878_p2), %s818_s16, 32, %s816_s30, %s254_s19  }
  0x78 PF: > { %s279_s7 = sand.u32 1, %s583_s9   ;;  %p879_p6 = scmp.ne.s32.totalorder %s874_s24, 0 }
  0x79   : > { %p880_p7 = scmp.ge.s32.totalorder %s603_s14, 2  ;;  %s280_s8 = scalar_lea.sflag [#allocation4], %s279_s7 }
  0x7b   : > { %p400_p9 = pnand %p880_p7, %p879_p6 }
  0x7d   : > { %578 = dma.done.wait (!%p400_p9), %s280_s8, 32  }
  0x7e   : > { %580 = vsyncadd (!%p400_p9), %s280_s8, 4294967264  ;;  %s21_s14 = sadd.s32 1, %s603_s14   ;;  %s881_s9 = smov %s587_s10 }
  0x7f   : > { %p18_p11 = scmp.ge.s32.totalorder %s21_s14, 4   ;;  %s882_s10 = smov %s591_s11 }
  0x80   : > { %s883_s11 = smov %s683_s23  ;;  %s884_s12 = smov %s599_s13 }
  0x81   : > { %s885_s13 = smov %s887_s17  ;;  %20 = sbr.rel (!%p18_p11) target bundleno = 8 (0x8), region = 90 }
  0x88   :  { %285 = vsyncpa [#allocation3], 1 }
  0x89   :  { %287 = vsyncpa [#allocation3 + $0x1], 1 }
  0x8a   :  { %288 = vsyncpa [#allocation6], 1 }
  0x8b   :  { %290 = vsyncpa [#allocation6 + $0x1], 1 }
  0x8c   :  { %291 = vsyncpa [#allocation4], 1 }
  0x8d   :  { %293 = vsyncpa [#allocation4 + $0x1], 1 }

</bundles_post_ra>
